<compile_context>
chip_gen: v6e
topology: v6e:2x2x1
jax: 0.10.0
libtpu: 0.0.40
codegen_flags: <defaults>
</compile_context>

<pallas_src>
import functools
import math

import jax
import jax.numpy as jnp
from jax.experimental import pallas as pl
from jax.experimental.pallas import tpu as pltpu

LN_EPS = 1e-5
SQRT_HALF = 0.7071067811865476  # 1/sqrt(2)
LANE = 128


def _round_up(x, m):
    return ((x + m - 1) // m) * m


def _vmem_capacity_bytes():
    """Physical VMEM per TensorCore (best effort, conservative fallback)."""
    try:
        info = pltpu.get_tpu_info()
        for name in ("vmem_capacity_bytes", "vmem_size_bytes", "vmem_bytes"):
            v = getattr(info, name, None)
            if v:
                return int(v)
    except Exception:
        pass
    return 64 << 20  # v7x per-TC VMEM — safe lower bound


def mlp_kernel(x_ref, w1_ref, b1_ref, w2_ref, b2_ref, o_ref, *, inv_c):
    # x_ref: (TM, C) tile of tokens, real channels only (no padding).
    x = x_ref[...].astype(jnp.float32)

    # ---- single-pass LayerNorm statistics (no mask needed: C is un-padded) ----
    s1 = jnp.sum(x, axis=-1, keepdims=True)
    s2 = jnp.sum(x * x, axis=-1, keepdims=True)
    mu = s1 * inv_c
    var = jnp.maximum(s2 * inv_c - mu * mu, 0.0)   # clamp: fp32 cancellation guard
    xn = (x - mu) * jax.lax.rsqrt(var + LN_EPS)
    # (gamma/beta folded into w1/b1 in prepare_params)

    # ---- fc1 on the MXU: bf16 operands, fp32 accumulation ----
    h = jnp.dot(xn.astype(jnp.bfloat16), w1_ref[...],
                preferred_element_type=jnp.float32) + b1_ref[...]

    # ---- exact GELU (PyTorch nn.GELU default: erf-based), fp32 ----
    h = 0.5 * h * (1.0 + jax.lax.erf(h * SQRT_HALF))
    # dropout(p=0.0) -> identity

    # ---- fc2 on the MXU ----
    y = jnp.dot(h.astype(jnp.bfloat16), w2_ref[...],
                preferred_element_type=jnp.float32) + b2_ref[...]
    # dropout(p=0.0) -> identity
    o_ref[...] = y.astype(o_ref.dtype)


def prepare_params(params):
    """Fold LN affine into fc1 (LoRA already folded), pad only the MXU output
    dims (H, O) to lane multiples, pre-transpose, pre-cast weights to bf16."""
    gamma = params["ln_gamma"].astype(jnp.float32)   # (C,)
    beta = params["ln_beta"].astype(jnp.float32)     # (C,)
    w1 = params["w1_eff"].astype(jnp.float32)        # (H, C)
    b1 = params["b1"].astype(jnp.float32)            # (H,)
    w2 = params["w2_eff"].astype(jnp.float32)        # (O, H)
    b2 = params["b2"].astype(jnp.float32)            # (O,)

    H, C = w1.shape
    O = w2.shape[0]

    # Fold LayerNorm affine into fc1 (exact same math).
    w1_fold = w1 * gamma[None, :]
    b1_fold = b1 + w1 @ beta

    H_pad = _round_up(H, LANE)
    O_pad = _round_up(O, LANE)

    # Contraction dim C stays un-padded (x streams at its real width); the
    # zero-padded H/O columns/rows keep the padding mathematically inert.
    w1t = jnp.pad(w1_fold.T, ((0, 0), (0, H_pad - H))).astype(jnp.bfloat16)      # (C, H_pad)
    w2t = jnp.pad(w2.T, ((0, H_pad - H), (0, O_pad - O))).astype(jnp.bfloat16)   # (H_pad, O_pad)
    b1p = jnp.pad(b1_fold, (0, H_pad - H)).reshape(1, H_pad)
    b2p = jnp.pad(b2, (0, O_pad - O)).reshape(1, O_pad)

    return {"w1t": w1t, "b1": b1p, "w2t": w2t, "b2": b2p,
            "C": C, "H": H, "O": O, "H_pad": H_pad, "O_pad": O_pad}


def mlp_pallas(x, prep, tm=None):
    """x: (B, N, C). prep: output of prepare_params. Returns (B, N, O)."""
    B, N, C = x.shape
    assert C == prep["C"], "channel dim mismatch vs prepared params"
    M = B * N
    H_pad, O_pad, O = prep["H_pad"], prep["O_pad"], prep["O"]

    vmem_cap = _vmem_capacity_bytes()
    # Generation-aware row tile: 512 on 128 MiB-VMEM chips (v5e/v6e), 256 on v7x.
    if tm is None:
        tm = 512 if vmem_cap >= (96 << 20) else 256
    tm_eff = min(tm, _round_up(M, 8))
    # Guarantee >=2 grid steps when there is enough work so the "parallel"
    # axis can shard across v7x's two TensorCores (harmless on 1-TC chips).
    if M > 256:
        tm_eff = min(tm_eff, _round_up(pl.cdiv(M, 2), 256))
    grid = (pl.cdiv(M, tm_eff),)

    xf = x.reshape(M, C)  # pure reshape — no pad, no extra HBM copy

    kernel = functools.partial(mlp_kernel, inv_c=1.0 / C)
    out_shape = jax.ShapeDtypeStruct((M, O_pad), x.dtype)
    x_bytes = jnp.dtype(x.dtype).itemsize

    def run(use_hints):
        def spec(shape, imap, bufs=None):
            if use_hints and bufs is not None:
                return pl.BlockSpec(shape, imap, pipeline_mode=pl.Buffered(bufs))
            return pl.BlockSpec(shape, imap)

        n_xbuf = 3 if use_hints else 2
        w_copies = 1 if use_hints else 2
        bytes_needed = (
            n_xbuf * tm_eff * C * x_bytes                 # streamed x tiles
            + 2 * tm_eff * O_pad * 4                      # output tiles
            + w_copies * (C * H_pad + H_pad * O_pad) * 2  # resident bf16 weights
            + 2 * (H_pad + O_pad) * 4                     # biases
            + 2 * tm_eff * H_pad * 4                      # hidden activation headroom
            + 2 * tm_eff * C * 4                          # LN temporaries headroom
        )
        vmem_limit = int(min(max(bytes_needed * 3 // 2 + (2 << 20), 16 << 20),
                             max(vmem_cap * 4 // 5, 32 << 20)))

        return pl.pallas_call(
            kernel,
            out_shape=out_shape,
            grid_spec=pltpu.PrefetchScalarGridSpec(
                num_scalar_prefetch=0,
                grid=grid,
                in_specs=[
                    spec((tm_eff, C), lambda i: (i, 0), bufs=3),      # x tile (3-deep)
                    spec((C, H_pad), lambda i: (0, 0), bufs=1),       # W1_eff^T (resident)
                    spec((1, H_pad), lambda i: (0, 0), bufs=1),       # b1 (LN-folded)
                    spec((H_pad, O_pad), lambda i: (0, 0), bufs=1),   # W2_eff^T (resident)
                    spec((1, O_pad), lambda i: (0, 0), bufs=1),       # b2
                ],
                out_specs=pl.BlockSpec((tm_eff, O_pad), lambda i: (i, 0)),
            ),
            compiler_params=pltpu.CompilerParams(
                dimension_semantics=("parallel",),
                vmem_limit_bytes=vmem_limit,
            ),
        )(xf, prep["w1t"], prep["b1"], prep["w2t"], prep["b2"])

    try:
        out = run(True)
    except Exception:
        # Fallback if this jax build rejects pipeline_mode / Buffered hints.
        out = run(False)

    if O_pad != O:
        out = out[:, :O]   # lane-only slice (M is already un-padded)
        # TODO(synk): downstream consumers could keep the O_pad layout to skip this copy.
    return out.reshape(B, N, O)


def init_params(key, in_features, hidden_features, out_features, lora_rank=4,
                lora_alpha=1.0):
    """Deterministic synthetic init mirroring the module's parameter shapes."""
    ks = jax.random.split(key, 10)

    def linear_init(kw, kb, fan_out, fan_in):
        bound = 1.0 / math.sqrt(fan_in)
        w = jax.random.uniform(kw, (fan_out, fan_in), jnp.float32, -bound, bound)
        b = jax.random.uniform(kb, (fan_out,), jnp.float32, -bound, bound)
        return w, b

    ln_gamma = jnp.ones((in_features,), jnp.float32)
    ln_beta = jnp.zeros((in_features,), jnp.float32)

    # fc1 = SVDLinear(in, hidden, r)
    w1, b1 = linear_init(ks[0], ks[1], hidden_features, in_features)
    a1 = 0.02 * jax.random.normal(ks[2], (lora_rank, in_features), jnp.float32)
    e1 = 0.1 * jax.random.normal(ks[3], (lora_rank, 1), jnp.float32)
    bb1 = 0.02 * jax.random.normal(ks[4], (hidden_features, lora_rank), jnp.float32)

    # fc2 = SVDLinear(hidden, out, r)
    w2, b2 = linear_init(ks[5], ks[6], out_features, hidden_features)
    a2 = 0.02 * jax.random.normal(ks[7], (lora_rank, hidden_features), jnp.float32)
    e2 = 0.1 * jax.random.normal(ks[8], (lora_rank, 1), jnp.float32)
    bb2 = 0.02 * jax.random.normal(ks[9], (out_features, lora_rank), jnp.float32)

    ranknum = float(lora_rank)
    lora_scale = lora_alpha / (ranknum + 1e-5)

    # Fold LoRA path into effective weights (exact):  W_eff = W + scale * B @ (A*E)
    w1_eff = w1 + lora_scale * (bb1 @ (a1 * e1))
    w2_eff = w2 + lora_scale * (bb2 @ (a2 * e2))

    return {
        "ln_gamma": ln_gamma, "ln_beta": ln_beta,
        "w1_eff": w1_eff, "b1": b1,
        "w2_eff": w2_eff, "b2": b2,
    }


def mlp_reference(x, params):
    """Plain-JAX fp32 reference (unfolded LN affine) for correctness checking."""
    mu = jnp.mean(x, axis=-1, keepdims=True)
    var = jnp.mean((x - mu) ** 2, axis=-1, keepdims=True)
    xn = (x - mu) / jnp.sqrt(var + LN_EPS)
    xn = xn * params["ln_gamma"] + params["ln_beta"]
    h = xn @ params["w1_eff"].T + params["b1"]
    h = jax.nn.gelu(h, approximate=False)
    y = h @ params["w2_eff"].T + params["b2"]
    return y


if __name__ == "__main__":
    key = jax.random.PRNGKey(0)
    kx, kp = jax.random.split(key)

    B, N = 2, 64
    in_features = 32
    hidden_features = 64
    out_features = in_features
    lora_rank = 4

    x = jax.random.normal(kx, (B, N, in_features), jnp.float32)
    params = init_params(kp, in_features, hidden_features, out_features,
                         lora_rank=lora_rank)
    prep = prepare_params(params)

    out = mlp_pallas(x, prep)
    out = jax.block_until_ready(out)

    ref = mlp_reference(x, params)
    assert out.shape == (B, N, out_features)
    # bf16 matmul operands with fp32 accumulation -> loosened tolerance.
    assert jnp.allclose(out, ref, atol=2e-2, rtol=2e-2), "mismatch vs reference"

    print("KERNEL_OK")
</pallas_src>

<mosaic_0001>
module attributes {stable_mosaic.version = 11 : i64} {
  func.func @mlp_kernel(%arg0: i32, %arg1: memref<128x32xf32, #tpu.memory_space<vmem>>, %arg2: memref<32x128xbf16, #tpu.memory_space<vmem>>, %arg3: memref<1x128xf32, #tpu.memory_space<vmem>>, %arg4: memref<128x128xbf16, #tpu.memory_space<vmem>>, %arg5: memref<1x128xf32, #tpu.memory_space<vmem>>, %arg6: memref<128x128xf32, #tpu.memory_space<vmem>>) attributes {dimension_semantics = [#tpu.dimension_semantics<parallel>], iteration_bounds = array<i64: 1>, scalar_prefetch = 0 : i64, scratch_operands = 0 : i64, tpu.core_type = #tpu.core_type<tc>, window_params = [{transform_indices = @transform_0, window_bounds = array<i64: 128, 32>}, {pipeline_mode = #tpu.pipeline_mode<synchronous>, transform_indices = @transform_1, window_bounds = array<i64: 32, 128>}, {pipeline_mode = #tpu.pipeline_mode<synchronous>, transform_indices = @transform_2, window_bounds = array<i64: 1, 128>}, {pipeline_mode = #tpu.pipeline_mode<synchronous>, transform_indices = @transform_3, window_bounds = array<i64: 128, 128>}, {pipeline_mode = #tpu.pipeline_mode<synchronous>, transform_indices = @transform_4, window_bounds = array<i64: 1, 128>}, {transform_indices = @transform_5, window_bounds = array<i64: 128, 128>}]} {
    %c0 = arith.constant 0 : index
    %c0_0 = arith.constant 0 : index
    %0 = vector.load %arg1[%c0, %c0_0] : memref<128x32xf32, #tpu.memory_space<vmem>>, vector<128x32xf32>
    %cst = arith.constant dense<0.000000e+00> : vector<128xf32>
    %1 = vector.multi_reduction <add>, %0, %cst [1] : vector<128x32xf32> to vector<128xf32>
    %2 = vector.shape_cast %1 : vector<128xf32> to vector<128x1xf32>
    %3 = arith.mulf %0, %0 : vector<128x32xf32>
    %cst_1 = arith.constant dense<0.000000e+00> : vector<128xf32>
    %4 = vector.multi_reduction <add>, %3, %cst_1 [1] : vector<128x32xf32> to vector<128xf32>
    %5 = vector.shape_cast %4 : vector<128xf32> to vector<128x1xf32>
    %cst_2 = arith.constant 3.125000e-02 : f32
    %6 = vector.broadcast %cst_2 : f32 to vector<128x1xf32>
    %7 = arith.mulf %2, %6 : vector<128x1xf32>
    %cst_3 = arith.constant 3.125000e-02 : f32
    %8 = vector.broadcast %cst_3 : f32 to vector<128x1xf32>
    %9 = arith.mulf %5, %8 : vector<128x1xf32>
    %10 = arith.mulf %7, %7 : vector<128x1xf32>
    %11 = arith.subf %9, %10 : vector<128x1xf32>
    %cst_4 = arith.constant 0.000000e+00 : f32
    %12 = vector.broadcast %cst_4 : f32 to vector<128x1xf32>
    %13 = arith.maximumf %11, %12 : vector<128x1xf32>
    %14 = vector.broadcast %7 : vector<128x1xf32> to vector<128x32xf32>
    %15 = arith.subf %0, %14 : vector<128x32xf32>
    %cst_5 = arith.constant 9.99999974E-6 : f32
    %16 = vector.broadcast %cst_5 : f32 to vector<128x1xf32>
    %17 = arith.addf %13, %16 : vector<128x1xf32>
    %18 = math.rsqrt %17 : vector<128x1xf32>
    %19 = vector.broadcast %18 : vector<128x1xf32> to vector<128x32xf32>
    %20 = arith.mulf %15, %19 : vector<128x32xf32>
    %21 = arith.truncf %20 : vector<128x32xf32> to vector<128x32xbf16>
    %c0_6 = arith.constant 0 : index
    %c0_7 = arith.constant 0 : index
    %22 = vector.load %arg2[%c0_6, %c0_7] : memref<32x128xbf16, #tpu.memory_space<vmem>>, vector<32x128xbf16>
    %cst_8 = arith.constant dense<0.000000e+00> : vector<128x128xf32>
    %23 = tpu.matmul %21, %22, %cst_8 {dimension_numbers = #tpu.dot_dimension_numbers<[1], [0], [0], [1], [0, 0, 1, 1], [], []>} : vector<128x32xbf16>, vector<32x128xbf16>, vector<128x128xf32> -> vector<128x128xf32>
    %c0_9 = arith.constant 0 : index
    %c0_10 = arith.constant 0 : index
    %24 = vector.load %arg3[%c0_9, %c0_10] : memref<1x128xf32, #tpu.memory_space<vmem>>, vector<1x128xf32>
    %25 = vector.broadcast %24 : vector<1x128xf32> to vector<128x128xf32>
    %26 = arith.addf %23, %25 : vector<128x128xf32>
    %cst_11 = arith.constant 5.000000e-01 : f32
    %27 = vector.broadcast %cst_11 : f32 to vector<128x128xf32>
    %28 = arith.mulf %27, %26 : vector<128x128xf32>
    %cst_12 = arith.constant 0.707106769 : f32
    %29 = vector.broadcast %cst_12 : f32 to vector<128x128xf32>
    %30 = arith.mulf %26, %29 : vector<128x128xf32>
    %31 = math.erf %30 : vector<128x128xf32>
    %cst_13 = arith.constant 1.000000e+00 : f32
    %32 = vector.broadcast %cst_13 : f32 to vector<128x128xf32>
    %33 = arith.addf %32, %31 : vector<128x128xf32>
    %34 = arith.mulf %28, %33 : vector<128x128xf32>
    %35 = arith.truncf %34 : vector<128x128xf32> to vector<128x128xbf16>
    %c0_14 = arith.constant 0 : index
    %c0_15 = arith.constant 0 : index
    %36 = vector.load %arg4[%c0_14, %c0_15] : memref<128x128xbf16, #tpu.memory_space<vmem>>, vector<128x128xbf16>
    %cst_16 = arith.constant dense<0.000000e+00> : vector<128x128xf32>
    %37 = tpu.matmul %35, %36, %cst_16 {dimension_numbers = #tpu.dot_dimension_numbers<[1], [0], [0], [1], [0, 0, 1, 1], [], []>} : vector<128x128xbf16>, vector<128x128xbf16>, vector<128x128xf32> -> vector<128x128xf32>
    %c0_17 = arith.constant 0 : index
    %c0_18 = arith.constant 0 : index
    %38 = vector.load %arg5[%c0_17, %c0_18] : memref<1x128xf32, #tpu.memory_space<vmem>>, vector<1x128xf32>
    %39 = vector.broadcast %38 : vector<1x128xf32> to vector<128x128xf32>
    %40 = arith.addf %37, %39 : vector<128x128xf32>
    %c0_19 = arith.constant 0 : index
    %c0_20 = arith.constant 0 : index
    %41 = vector.load %arg6[%c0_19, %c0_20] : memref<128x128xf32, #tpu.memory_space<vmem>>, vector<128x128xf32>
    tpu.vector_store %arg6[%c0_19, %c0_20], %40 {strides = array<i32>} : memref<128x128xf32, #tpu.memory_space<vmem>>, vector<128x128xf32>,
    return
  }
  func.func @transform_0(%arg0: i32) -> (i32, i32) {
    %c0_i32 = arith.constant 0 : i32
    %c0_i32_0 = arith.constant 0 : i32
    return %arg0, %c0_i32 : i32, i32
  }
  func.func @transform_1(%arg0: i32) -> (i32, i32) {
    %c0_i32 = arith.constant 0 : i32
    %c0_i32_0 = arith.constant 0 : i32
    %c0_i32_1 = arith.constant 0 : i32
    return %c0_i32, %c0_i32_0 : i32, i32
  }
  func.func @transform_2(%arg0: i32) -> (i32, i32) {
    %c0_i32 = arith.constant 0 : i32
    %c0_i32_0 = arith.constant 0 : i32
    %c0_i32_1 = arith.constant 0 : i32
    return %c0_i32, %c0_i32_0 : i32, i32
  }
  func.func @transform_3(%arg0: i32) -> (i32, i32) {
    %c0_i32 = arith.constant 0 : i32
    %c0_i32_0 = arith.constant 0 : i32
    %c0_i32_1 = arith.constant 0 : i32
    return %c0_i32, %c0_i32_0 : i32, i32
  }
  func.func @transform_4(%arg0: i32) -> (i32, i32) {
    %c0_i32 = arith.constant 0 : i32
    %c0_i32_0 = arith.constant 0 : i32
    %c0_i32_1 = arith.constant 0 : i32
    return %c0_i32, %c0_i32_0 : i32, i32
  }
  func.func @transform_5(%arg0: i32) -> (i32, i32) {
    %c0_i32 = arith.constant 0 : i32
    %c0_i32_0 = arith.constant 0 : i32
    return %arg0, %c0_i32 : i32, i32
  }
}

</mosaic_0001>

<bundles_post_ra>
// kernel: tpu_custom_call.1
= control target key start
LH: loop header
LB: loop body
LE: loop exit
PB: predicated region body
PF: predicated region fallthrough
CT: control target
= control target key end

     0   :  { %vm38_vm0 = vcmask 261120   ;;  %s1282_s0 = inlined_call_operand.vmem [shape: f32[128,32], index: 0, kind: input, shape index: {}]   ;;  %s1283_s1 = inlined_call_operand.vmem [shape: bf16[32,128], index: 1, kind: input, shape index: {}]   ;;  %s1284_s2 = inlined_call_operand.vmem [shape: f32[1,128], index: 2, kind: input, shape index: {}]   ;;  %s1285_s3 = inlined_call_operand.vmem [shape: bf16[128,128], index: 3, kind: input, shape index: {}]   ;;  %s1286_s4 = inlined_call_operand.vmem [shape: f32[1,128], index: 4, kind: input, shape index: {}]   ;;  %s1287_s5 = inlined_call_operand.hbm [shape: f32[128,128], index: 5, kind: output, shape index: {}]  }
   0x1   :  { %v984_v0 = vld [vmem:[%s1282_s0 + $0x10] sm:$0xff]  ;;  %v989_v1 = vld [vmem:[%s1282_s0] sm:$0xff]  ;;  %v994_v2 = vld [vmem:[%s1282_s0 + $0x18] sm:$0xff] }
   0x2   :  { %v45_v3 = vsel %vm38_vm0, %v984_v0, 0.0  ;;  %v39_v4 = vsel %vm38_vm0, %v989_v1, 0.0  ;;  %v1003_v5 = vld [vmem:[%s1282_s0 + $0x8] sm:$0xff]  ;;  %v48_v6 = vsel %vm38_vm0, %v994_v2, 0.0  ;;  %v87_v9 = vmul.f32 %v989_v1, %v989_v1  ;;  %v1029_v17 = vld [vmem:[%s1282_s0 + $0x20] sm:$0xff]  ;;  %v1038_v20 = vld [vmem:[%s1282_s0 + $0x38] sm:$0xff] }
   0x3   :  { %46 = vadd.xlane.f32.xlu1 %v45_v3  ;;  %40 = vadd.xlane.f32.xlu0 %v39_v4  ;;  %v42_v7 = vsel %vm38_vm0, %v1003_v5, 0.0  ;;  %v88_v8 = vmul.f32 %v1003_v5, %v1003_v5  ;;  %v90_v10 = vmul.f32 %v994_v2, %v994_v2  ;;  %v89_v11 = vmul.f32 %v984_v0, %v984_v0  ;;  %v1024_v16 = vld [vmem:[%s1282_s0 + $0x28] sm:$0xff]  ;;  %v1043_v21 = vld [vmem:[%s1282_s0 + $0x30] sm:$0xff] }
   0x4   :  { %v103_v13 = vsel %vm38_vm0, %v87_v9, 0.0  ;;  %v54_v18 = vsel %vm38_vm0, %v1024_v16, 0.0  ;;  %v51_v19 = vsel %vm38_vm0, %v1029_v17, 0.0 }
   0x5   :  { %v106_v12 = vsel %vm38_vm0, %v88_v8, 0.0  ;;  %v112_v14 = vsel %vm38_vm0, %v90_v10, 0.0  ;;  %v109_v15 = vsel %vm38_vm0, %v89_v11, 0.0 }
   0x7   :  { %49 = vadd.xlane.f32.xlu1 %v48_v6  ;;  %43 = vadd.xlane.f32.xlu0 %v42_v7 }
   0xb   :  { %107 = vadd.xlane.f32.xlu1 %v106_v12  ;;  %104 = vadd.xlane.f32.xlu0 %v103_v13 }
   0xf   :  { %113 = vadd.xlane.f32.xlu1 %v112_v14  ;;  %110 = vadd.xlane.f32.xlu0 %v109_v15 }
  0x10   :  { %10 = vsyncpa [#allocation3], 0  ;;  %v60_v22 = vsel %vm38_vm0, %v1038_v20, 0.0  ;;  %v57_v23 = vsel %vm38_vm0, %v1043_v21, 0.0  ;;  %v92_v24 = vmul.f32 %v1024_v16, %v1024_v16  ;;  %v91_v25 = vmul.f32 %v1029_v17, %v1029_v17  ;;  %v1064_v32 = vld [vmem:[%s1282_s0 + $0x48] sm:$0xff]  ;;  %v1069_v33 = vld [vmem:[%s1282_s0 + $0x40] sm:$0xff] }
  0x11   :  { %v94_v28 = vmul.f32 %v1038_v20, %v1038_v20  ;;  %v93_v29 = vmul.f32 %v1043_v21, %v1043_v21  ;;  %v66_v34 = vsel %vm38_vm0, %v1064_v32, 0.0  ;;  %v63_v35 = vsel %vm38_vm0, %v1069_v33, 0.0  ;;  %v1078_v36 = vld [vmem:[%s1282_s0 + $0x58] sm:$0xff]  ;;  %v1083_v37 = vld [vmem:[%s1282_s0 + $0x50] sm:$0xff]  ;;  %v852_v46 = vld [vmem:[%s1283_s1 + $0x8] sm:$0xff]  }
  0x12   :  { %v118_v26 = vsel %vm38_vm0, %v92_v24, 0.0  ;;  %v115_v27 = vsel %vm38_vm0, %v91_v25, 0.0  ;;  %v72_v38 = vsel %vm38_vm0, %v1078_v36, 0.0  ;;  %v69_v39 = vsel %vm38_vm0, %v1083_v37, 0.0  ;;  %781 = vmatprep.subr.bf16.mxu0 %v852_v46  ;;  %v1107_v49 = vld [vmem:[%s1282_s0 + $0x68] sm:$0xff]  ;;  %v1112_v50 = vld [vmem:[%s1282_s0 + $0x60] sm:$0xff] }
  0x13   :  { %55 = vadd.xlane.f32.xlu1 %v54_v18  ;;  %52 = vadd.xlane.f32.xlu0 %v51_v19  ;;  %v124_v30 = vsel %vm38_vm0, %v94_v28, 0.0  ;;  %v121_v31 = vsel %vm38_vm0, %v93_v29, 0.0  ;;  %v96_v40 = vmul.f32 %v1064_v32, %v1064_v32  ;;  %v95_v41 = vmul.f32 %v1069_v33, %v1069_v33  ;;  %v853_v51 = vld [vmem:[%s1283_s1] sm:$0xff]   ;;  %v1124_v54 = vld [vmem:[%s1282_s0 + $0x78] sm:$0xff]  ;;  %v1129_v55 = vld [vmem:[%s1282_s0 + $0x70] sm:$0xff] }
  0x14   :  { %v98_v44 = vmul.f32 %v1078_v36, %v1078_v36  ;;  %v97_v45 = vmul.f32 %v1083_v37, %v1083_v37  ;;  %782 = vmatpush3.bf16.msra.mxu0 %v852_v46  ;;  %v78_v52 = vsel %vm38_vm0, %v1107_v49, 0.0  ;;  %v75_v53 = vsel %vm38_vm0, %v1112_v50, 0.0 }
  0x15   :  { %v130_v42 = vsel %vm38_vm0, %v96_v40, 0.0  ;;  %v127_v43 = vsel %vm38_vm0, %v95_v41, 0.0  ;;  %783 = vmatprep.subr.bf16.mxu0 %v853_v51  ;;  %v84_v56 = vsel %vm38_vm0, %v1124_v54, 0.0  ;;  %v81_v57 = vsel %vm38_vm0, %v1129_v55, 0.0 }
  0x16   :  { %v136_v47 = vsel %vm38_vm0, %v98_v44, 0.0  ;;  %v133_v48 = vsel %vm38_vm0, %v97_v45, 0.0  ;;  %v100_v58 = vmul.f32 %v1107_v49, %v1107_v49  ;;  %v99_v59 = vmul.f32 %v1112_v50, %v1112_v50 }
  0x17   :  { %61 = vadd.xlane.f32.xlu1 %v60_v22  ;;  %58 = vadd.xlane.f32.xlu0 %v57_v23  ;;  %v102_v62 = vmul.f32 %v1124_v54, %v1124_v54  ;;  %v101_v63 = vmul.f32 %v1129_v55, %v1129_v55 }
  0x18   :  { %784 = vmatpush3.bf16.msra.mxu0 %v853_v51  ;;  %v142_v60 = vsel %vm38_vm0, %v100_v58, 0.0  ;;  %v139_v61 = vsel %vm38_vm0, %v99_v59, 0.0 }
  0x19   :  { %v148_v3 = vsel %vm38_vm0, %v102_v62, 0.0  ;;  %v145_v4 = vsel %vm38_vm0, %v101_v63, 0.0 }
  0x1b   :  { %119 = vadd.xlane.f32.xlu1 %v118_v26  ;;  %116 = vadd.xlane.f32.xlu0 %v115_v27 }
  0x1f   :  { %125 = vadd.xlane.f32.xlu1 %v124_v30  ;;  %122 = vadd.xlane.f32.xlu0 %v121_v31 }
  0x23   :  { %67 = vadd.xlane.f32.xlu1 %v66_v34  ;;  %64 = vadd.xlane.f32.xlu0 %v63_v35 }
  0x27   :  { %73 = vadd.xlane.f32.xlu1 %v72_v38  ;;  %70 = vadd.xlane.f32.xlu0 %v69_v39 }
  0x2b   :  { %131 = vadd.xlane.f32.xlu1 %v130_v42  ;;  %128 = vadd.xlane.f32.xlu0 %v127_v43 }
  0x2f   :  { %137 = vadd.xlane.f32.xlu1 %v136_v47  ;;  %134 = vadd.xlane.f32.xlu0 %v133_v48 }
  0x33   :  { %79 = vadd.xlane.f32.xlu1 %v78_v52  ;;  %76 = vadd.xlane.f32.xlu0 %v75_v53 }
  0x37   :  { %85 = vadd.xlane.f32.xlu1 %v84_v56  ;;  %82 = vadd.xlane.f32.xlu0 %v81_v57 }
  0x3b   :  { %143 = vadd.xlane.f32.xlu1 %v142_v60  ;;  %140 = vadd.xlane.f32.xlu0 %v139_v61 }
  0x3f   :  { %149 = vadd.xlane.f32.xlu1 %v148_v3  ;;  %146 = vadd.xlane.f32.xlu0 %v145_v4 }
  0x8c   :  { %v47_v6 = vpop.xlane.xlu1 %46  ;;  %v41_v7 = vpop.xlane.xlu0 %40 }
  0x8d   :  { %v1147_v10 = vmul.f32 0.03125, %v41_v7  ;;  %v1151_v12 = vmul.f32 0.03125, %v47_v6 }
  0x8f   :  { %v183_v18 = vmul.f32 %v1147_v10, %v1147_v10  ;;  %v185_v26 = vmul.f32 %v1151_v12, %v1151_v12 }
  0x90   :  { %v50_v8 = vpop.xlane.xlu1 %49  ;;  %v44_v9 = vpop.xlane.xlu0 %43 }
  0x91   :  { %v1149_v11 = vmul.f32 0.03125, %v44_v9  ;;  %v1153_v13 = vmul.f32 0.03125, %v50_v8 }
  0x93   :  { %v184_v19 = vmul.f32 %v1149_v11, %v1149_v11  ;;  %v186_v27 = vmul.f32 %v1153_v13, %v1153_v13 }
  0x94   :  { %v108_v14 = vpop.xlane.xlu1 %107  ;;  %v105_v15 = vpop.xlane.xlu0 %104 }
  0x95   :  { %v168_v22 = vmul.f32 0.03125, %v108_v14  ;;  %v167_v23 = vmul.f32 0.03125, %v105_v15 }
  0x97   :  { %v200_v24 = vsub.f32 %v168_v22, %v184_v19  ;;  %v199_v25 = vsub.f32 %v167_v23, %v183_v18  ;;  %v231_v23 = vsub.f32 %v989_v1, %v1147_v10  ;;  %v234_v1 = vsub.f32 %v994_v2, %v1153_v13 }
  0x98   :  { %v114_v28 = vpop.xlane.xlu1 %113  ;;  %v111_v29 = vpop.xlane.xlu0 %110 }
  0x99   :  { %v216_v30 = vmax.f32 %v200_v24, 0.0  ;;  %v215_v31 = vmax.f32 %v199_v25, 0.0  ;;  %v170_v34 = vmul.f32 0.03125, %v114_v28  ;;  %v169_v35 = vmul.f32 0.03125, %v111_v29 }
  0x9a   :  { %v232_v24 = vsub.f32 %v1003_v5, %v1149_v11 }
  0x9b   :  { %v248_v38 = vadd.f32 1e-05, %v216_v30  ;;  %v247_v39 = vadd.f32 1e-05, %v215_v31  ;;  %v202_v40 = vsub.f32 %v170_v34, %v186_v27  ;;  %v201_v41 = vsub.f32 %v169_v35, %v185_v26 }
  0x9c   :  { %v56_v42 = vpop.xlane.xlu1 %55  ;;  %v53_v43 = vpop.xlane.xlu0 %52 }
  0x9d   :  { %862 = vrsqrt.f32 %v248_v38  ;;  %v218_v44 = vmax.f32 %v202_v40, 0.0  ;;  %v217_v45 = vmax.f32 %v201_v41, 0.0  ;;  %v1163_v52 = vmul.f32 0.03125, %v56_v42 }
  0x9e   :  { %864 = vrsqrt.f32 %v247_v39  ;;  %v1165_v53 = vmul.f32 0.03125, %v53_v43  ;;  %v233_v41 = vsub.f32 %v984_v0, %v1151_v12 }
  0x9f   :  { %v250_v46 = vadd.f32 1e-05, %v218_v44  ;;  %v249_v47 = vadd.f32 1e-05, %v217_v45  ;;  %v188_v60 = vmul.f32 %v1163_v52, %v1163_v52 }
  0xa0   :  { %v62_v48 = vpop.xlane.xlu1 %61  ;;  %v59_v51 = vpop.xlane.xlu0 %58  ;;  %v187_v61 = vmul.f32 %v1165_v53, %v1165_v53 }
  0xa1   :  { %866 = vrsqrt.f32 %v250_v46  ;;  %v1167_v56 = vmul.f32 0.03125, %v62_v48  ;;  %v1169_v57 = vmul.f32 0.03125, %v59_v51 }
  0xa2   :  { %868 = vrsqrt.f32 %v249_v47 }
  0xa3   :  { %v190_v6 = vmul.f32 %v1167_v56, %v1167_v56  ;;  %v189_v7 = vmul.f32 %v1169_v57, %v1169_v57 }
  0xa4   :  { %v120_v58 = vpop.xlane.xlu1 %119  ;;  %v117_v59 = vpop.xlane.xlu0 %116 }
  0xa5   :  { %v172_v62 = vmul.f32 0.03125, %v120_v58  ;;  %v171_v63 = vmul.f32 0.03125, %v117_v59 }
  0xa7   :  { %v204_v3 = vsub.f32 %v172_v62, %v188_v60  ;;  %v203_v4 = vsub.f32 %v171_v63, %v187_v61 }
  0xa8   :  { %v126_v8 = vpop.xlane.xlu1 %125  ;;  %v123_v9 = vpop.xlane.xlu0 %122 }
  0xa9   :  { %v220_v14 = vmax.f32 %v204_v3, 0.0  ;;  %v219_v15 = vmax.f32 %v203_v4, 0.0  ;;  %v174_v18 = vmul.f32 0.03125, %v126_v8  ;;  %v173_v19 = vmul.f32 0.03125, %v123_v9 }
  0xaa   :  { %v863_v22 = vpop.eup %862 }
  0xab   :  { %v865_v25 = vpop.eup %864  ;;  %v252_v26 = vadd.f32 1e-05, %v220_v14  ;;  %v251_v27 = vadd.f32 1e-05, %v219_v15  ;;  %v206_v28 = vsub.f32 %v174_v18, %v190_v6  ;;  %v205_v29 = vsub.f32 %v173_v19, %v189_v7 }
  0xac   :  { %v68_v30 = vpop.xlane.xlu1 %67  ;;  %v65_v31 = vpop.xlane.xlu0 %64  ;;  %v279_v34 = vmul.f32 %v865_v25, %v231_v23  ;;  %v280_v35 = vmul.f32 %v863_v22, %v232_v24  ;;  %v236_v19 = vsub.f32 %v1024_v16, %v1163_v52  ;;  %v235_v22 = vsub.f32 %v1029_v17, %v1165_v53 }
  0xad   :  { %870 = vrsqrt.f32 %v252_v26  ;;  %v222_v38 = vmax.f32 %v206_v28, 0.0  ;;  %v221_v39 = vmax.f32 %v205_v29, 0.0  ;;  %v1188_v47 = vmul.f32 0.03125, %v68_v30 }
  0xae   :  { %v867_v40 = vpop.eup %866  ;;  %872 = vrsqrt.f32 %v251_v27  ;;  %v295_v5 = vpack.c.bf16 %v280_v35, %v279_v34  ;;  %v1190_v48 = vmul.f32 0.03125, %v65_v31  ;;  %v237_v16 = vsub.f32 %v1043_v21, %v1169_v57 }
  0xaf   :  { %v869_v10 = vpop.eup %868  ;;  %v254_v11 = vadd.f32 1e-05, %v222_v38  ;;  %v253_v42 = vadd.f32 1e-05, %v221_v39  ;;  %v282_v46 = vmul.f32 %v867_v40, %v234_v1  ;;  %v192_v58 = vmul.f32 %v1188_v47, %v1188_v47 }
  0xb0   :  { %785 = vmatprep.mubr.msk.bf16.mxu0 %vm38_vm0, %v295_v5  ;;  %v74_v43 = vpop.xlane.xlu1 %73  ;;  %v71_v44 = vpop.xlane.xlu0 %70  ;;  %v281_v45 = vmul.f32 %v869_v10, %v233_v41  ;;  %v191_v59 = vmul.f32 %v1190_v48, %v1190_v48  ;;  %v238_v39 = vsub.f32 %v1038_v20, %v1167_v56 }
  0xb1   :  { %874 = vrsqrt.f32 %v254_v11  ;;  %v1192_v12 = vmul.f32 0.03125, %v74_v43  ;;  %v1194_v2 = vmul.f32 0.03125, %v71_v44 }
  0xb2   :  { %876 = vrsqrt.f32 %v253_v42  ;;  %v296_v0 = vpack.c.bf16 %v282_v46, %v281_v45 }
  0xb3   :  { %v194_v3 = vmul.f32 %v1192_v12, %v1192_v12  ;;  %v193_v4 = vmul.f32 %v1194_v2, %v1194_v2 }
  0xb4   :  { %786 = vmatmul.mubr.msk.bf16.vlgmr.msra.gmra.mxu0 %vm38_vm0, %v296_v0  ;;  %v132_v13 = vpop.xlane.xlu1 %131  ;;  %v129_v51 = vpop.xlane.xlu0 %128 }
  0xb5   :  { %v176_v60 = vmul.f32 0.03125, %v132_v13  ;;  %v175_v61 = vmul.f32 0.03125, %v129_v51 }
  0xb7   :  { %v208_v62 = vsub.f32 %v176_v60, %v192_v58  ;;  %v207_v63 = vsub.f32 %v175_v61, %v191_v59 }
  0xb8   :  { %v138_v6 = vpop.xlane.xlu1 %137  ;;  %v135_v7 = vpop.xlane.xlu0 %134 }
  0xb9   :  { %v224_v8 = vmax.f32 %v208_v62, 0.0  ;;  %v223_v9 = vmax.f32 %v207_v63, 0.0  ;;  %v178_v14 = vmul.f32 0.03125, %v138_v6  ;;  %v177_v15 = vmul.f32 0.03125, %v135_v7 }
  0xba   :  { %v871_v18 = vpop.eup %870  ;;  %v240_v7 = vsub.f32 %v1064_v32, %v1188_v47  ;;  %v241_v32 = vsub.f32 %v1083_v37, %v1194_v2 }
  0xbb   :  { %v873_v23 = vpop.eup %872  ;;  %v256_v24 = vadd.f32 1e-05, %v224_v8  ;;  %v255_v25 = vadd.f32 1e-05, %v223_v9  ;;  %v210_v26 = vsub.f32 %v178_v14, %v194_v3  ;;  %v209_v27 = vsub.f32 %v177_v15, %v193_v4 }
  0xbc   :  { %v80_v28 = vpop.xlane.xlu1 %79  ;;  %v77_v29 = vpop.xlane.xlu0 %76  ;;  %v283_v30 = vmul.f32 %v873_v23, %v235_v22  ;;  %v284_v31 = vmul.f32 %v871_v18, %v236_v19  ;;  %v239_v8 = vsub.f32 %v1069_v33, %v1190_v48 }
  0xbd   :  { %878 = vrsqrt.f32 %v256_v24  ;;  %v226_v34 = vmax.f32 %v210_v26, 0.0  ;;  %v225_v35 = vmax.f32 %v209_v27, 0.0  ;;  %v164_v11 = vmul.f32 0.03125, %v80_v28 }
  0xbe   :  { %v875_v38 = vpop.eup %874  ;;  %880 = vrsqrt.f32 %v255_v25  ;;  %v297_v17 = vpack.c.bf16 %v284_v31, %v283_v30  ;;  %v163_v42 = vmul.f32 0.03125, %v77_v29  ;;  %v242_v24 = vsub.f32 %v1078_v36, %v1192_v12 }
  0xbf   :  { %v877_v52 = vpop.eup %876  ;;  %v258_v53 = vadd.f32 1e-05, %v226_v34  ;;  %v257_v40 = vadd.f32 1e-05, %v225_v35  ;;  %v286_v10 = vmul.f32 %v875_v38, %v238_v39  ;;  %v196_v44 = vmul.f32 %v164_v11, %v164_v11 }
  0xc0   :  { %789 = vmatprep.mubr.msk.bf16.mxu0 %vm38_vm0, %v297_v17  ;;  %v86_v41 = vpop.xlane.xlu1 %85  ;;  %v83_v1 = vpop.xlane.xlu0 %82  ;;  %v285_v5 = vmul.f32 %v877_v52, %v237_v16  ;;  %v195_v45 = vmul.f32 %v163_v42, %v163_v42  ;;  %v244_v36 = vsub.f32 %v1107_v49, %v164_v11  ;;  %v243_v34 = vsub.f32 %v1112_v50, %v163_v42  ;;  %v854_v49 = vld [vmem:[%s1285_s3 + $0x38] sm:$0xff]   ;;  %v855_v50 = vld [vmem:[%s1285_s3 + $0x30] sm:$0xff]   ;;  %v861_v11 = vld [vmem:[%s1285_s3] sm:$0xff]  }
  0xc1   :  { %882 = vrsqrt.f32 %v258_v53  ;;  %v166_v20 = vmul.f32 0.03125, %v86_v41  ;;  %v165_v56 = vmul.f32 0.03125, %v83_v1  ;;  %801 = vmatprep.subr.bf16.mxu0 %v854_v49  ;;  %833 = vmatprep.subr.bf16.mxu1 %v854_v49  ;;  %v858_v1 = vld [vmem:[%s1285_s3 + $0x18] sm:$0xff]   ;;  %v1258_v42 = vld [vmem:[%s1284_s2] ss:$0 sm:$0xff] }
  0xc2   :  { %884 = vrsqrt.f32 %v257_v40  ;;  %v298_v43 = vpack.c.bf16 %v286_v10, %v285_v5  ;;  %802 = vmatpush3.bf16.msra.mxu0 %v854_v49  ;;  %841 = vmatpush3.bf16.msra.mxu1 %v854_v49  ;;  %v859_v5 = vld [vmem:[%s1285_s3 + $0x10] sm:$0xff]   ;;  %v860_v10 = vld [vmem:[%s1285_s3 + $0x8] sm:$0xff]  }
  0xc3   :  { %v198_v58 = vmul.f32 %v166_v20, %v166_v20  ;;  %v197_v59 = vmul.f32 %v165_v56, %v165_v56  ;;  %v246_v38 = vsub.f32 %v1124_v54, %v166_v20  ;;  %v245_v16 = vsub.f32 %v1129_v55, %v165_v56  ;;  %803 = vmatprep.subr.bf16.mxu0 %v855_v50  ;;  %v856_v54 = vld [vmem:[%s1285_s3 + $0x28] sm:$0xff]   ;;  %v857_v55 = vld [vmem:[%s1285_s3 + $0x20] sm:$0xff]  }
  0xc4   :  { %790 = vmatmul.mubr.msk.bf16.gmra.mxu0 %vm38_vm0, %v298_v43  ;;  %v144_v21 = vpop.xlane.xlu1 %143  ;;  %v141_v57 = vpop.xlane.xlu0 %140  ;;  %834 = vmatprep.subr.bf16.mxu1 %v855_v50 }
  0xc5   :  { %v180_v46 = vmul.f32 0.03125, %v144_v21  ;;  %v179_v0 = vmul.f32 0.03125, %v141_v57 }
  0xc6   :  { %804 = vmatpush3.bf16.msra.mxu0 %v855_v50  ;;  %842 = vmatpush3.bf16.msra.mxu1 %v855_v50 }
  0xc7   :  { %v212_v13 = vsub.f32 %v180_v46, %v196_v44  ;;  %v211_v51 = vsub.f32 %v179_v0, %v195_v45  ;;  %805 = vmatprep.subr.bf16.mxu0 %v856_v54  ;;  %835 = vmatprep.subr.bf16.mxu1 %v856_v54 }
  0xc8   :  { %v150_v60 = vpop.xlane.xlu1 %149  ;;  %v147_v61 = vpop.xlane.xlu0 %146 }
  0xc9   :  { %v228_v62 = vmax.f32 %v212_v13, 0.0  ;;  %v227_v63 = vmax.f32 %v211_v51, 0.0  ;;  %v182_v3 = vmul.f32 0.03125, %v150_v60  ;;  %v181_v4 = vmul.f32 0.03125, %v147_v61 }
  0xca   :  { %v879_v6 = vpop.eup %878  ;;  %806 = vmatpush3.bf16.msra.mxu0 %v856_v54  ;;  %843 = vmatpush3.bf16.msra.mxu1 %v856_v54 }
  0xcb   :  { %v881_v9 = vpop.eup %880  ;;  %v260_v14 = vadd.f32 1e-05, %v228_v62  ;;  %v259_v15 = vadd.f32 1e-05, %v227_v63  ;;  %v214_v18 = vsub.f32 %v182_v3, %v198_v58  ;;  %v213_v19 = vsub.f32 %v181_v4, %v197_v59  ;;  %807 = vmatprep.subr.bf16.mxu0 %v857_v55  ;;  %836 = vmatprep.subr.bf16.mxu1 %v857_v55 }
  0xcc   :  { %v287_v22 = vmul.f32 %v881_v9, %v239_v8  ;;  %v288_v23 = vmul.f32 %v879_v6, %v240_v7 }
  0xcd   :  { %886 = vrsqrt.f32 %v260_v14  ;;  %v230_v25 = vmax.f32 %v214_v18, 0.0  ;;  %v229_v26 = vmax.f32 %v213_v19, 0.0 }
  0xce   :  { %v883_v27 = vpop.eup %882  ;;  %888 = vrsqrt.f32 %v259_v15  ;;  %v299_v47 = vpack.c.bf16 %v288_v23, %v287_v22  ;;  %808 = vmatpush3.bf16.msra.mxu0 %v857_v55  ;;  %844 = vmatpush3.bf16.msra.mxu1 %v857_v55 }
  0xcf   :  { %v885_v33 = vpop.eup %884  ;;  %v262_v48 = vadd.f32 1e-05, %v230_v25  ;;  %v261_v28 = vadd.f32 1e-05, %v229_v26  ;;  %v290_v29 = vmul.f32 %v883_v27, %v242_v24  ;;  %809 = vmatprep.subr.bf16.mxu0 %v858_v1  ;;  %837 = vmatprep.subr.bf16.mxu1 %v858_v1 }
  0xd0   :  { %793 = vmatprep.mubr.msk.bf16.mxu0 %vm38_vm0, %v299_v47  ;;  %v289_v30 = vmul.f32 %v885_v33, %v241_v32 }
  0xd1   :  { %890 = vrsqrt.f32 %v262_v48 }
  0xd2   :  { %892 = vrsqrt.f32 %v261_v28  ;;  %v300_v31 = vpack.c.bf16 %v290_v29, %v289_v30  ;;  %810 = vmatpush3.bf16.msra.mxu0 %v858_v1  ;;  %845 = vmatpush3.bf16.msra.mxu1 %v858_v1 }
  0xd3   :  { %811 = vmatprep.subr.bf16.mxu0 %v859_v5  ;;  %838 = vmatprep.subr.bf16.mxu1 %v859_v5 }
  0xd4   :  { %794 = vmatmul.mubr.msk.bf16.gmra.mxu0 %vm38_vm0, %v300_v31 }
  0xd6   :  { %812 = vmatpush3.bf16.msra.mxu0 %v859_v5  ;;  %846 = vmatpush3.bf16.msra.mxu1 %v859_v5 }
  0xd7   :  { %813 = vmatprep.subr.bf16.mxu0 %v860_v10  ;;  %839 = vmatprep.subr.bf16.mxu1 %v860_v10 }
  0xda   :  { %v887_v12 = vpop.eup %886  ;;  %814 = vmatpush3.bf16.msra.mxu0 %v860_v10  ;;  %847 = vmatpush3.bf16.msra.mxu1 %v860_v10 }
  0xdb   :  { %v889_v37 = vpop.eup %888  ;;  %v292_v2 = vmul.f32 %v887_v12, %v244_v36  ;;  %815 = vmatprep.subr.bf16.mxu0 %v861_v11  ;;  %840 = vmatprep.subr.bf16.mxu1 %v861_v11 }
  0xdc   :  { %v291_v35 = vmul.f32 %v889_v37, %v243_v34 }
  0xde   :  { %v891_v39 = vpop.eup %890  ;;  %v301_v17 = vpack.c.bf16 %v292_v2, %v291_v35  ;;  %816 = vmatpush3.bf16.msra.mxu0 %v861_v11  ;;  %848 = vmatpush3.bf16.msra.mxu1 %v861_v11 }
  0xdf   :  { %v893_v52 = vpop.eup %892  ;;  %v294_v53 = vmul.f32 %v891_v39, %v246_v38 }
  0xe0   :  { %797 = vmatprep.mubr.msk.bf16.mxu0 %vm38_vm0, %v301_v17  ;;  %v293_v40 = vmul.f32 %v893_v52, %v245_v16 }
  0xe2   :  { %v302_v41 = vpack.c.bf16 %v294_v53, %v293_v40 }
  0xe4   :  { %798 = vmatmul.mubr.msk.bf16.gmra.mxu0 %vm38_vm0, %v302_v41 }
 0x174   :  { %v787_v43 = vpop.f32.mrf.mxu0 }
 0x175   :  { %v393_v20 = vadd.f32 %v787_v43, %v1258_v42 }
 0x176   :  { %v384_v56 = vpop.f32.mrf.mxu0 }
 0x177   :  { %v385_v21 = vadd.f32 %v1258_v42, %v384_v56  ;;  %v465_v57 = vmul.f32 0.70710677, %v393_v20  ;;  %v449_v33 = vmul.f32 0.5, %v393_v20 }
 0x178   :  { %v788_v44 = vpop.f32.mrf.mxu0 }
 0x179   :  { %v463_v45 = vmul.f32 0.70710677, %v385_v21  ;;  %v396_v46 = vadd.f32 %v788_v44, %v1258_v42  ;;  %v447_v26 = vmul.f32 0.5, %v385_v21 }
 0x17a   :  { %v387_v0 = vpop.f32.mrf.mxu0 }
 0x17b   :  { %894 = verf.f32 %v463_v45  ;;  %v466_v13 = vmul.f32 0.70710677, %v396_v46  ;;  %v388_v51 = vadd.f32 %v1258_v42, %v387_v0  ;;  %v450_v24 = vmul.f32 0.5, %v396_v46 }
 0x17c   :  { %896 = verf.f32 %v465_v57 }
 0x17d   :  { %898 = verf.f32 %v466_v13  ;;  %v464_v58 = vmul.f32 0.70710677, %v388_v51  ;;  %v448_v27 = vmul.f32 0.5, %v388_v51 }
 0x17f   :  { %900 = verf.f32 %v464_v58 }
 0x184   :  { %v791_v59 = vpop.f32.mrf.mxu0 }
 0x185   :  { %v409_v60 = vadd.f32 %v791_v59, %v1258_v42 }
 0x186   :  { %v400_v61 = vpop.f32.mrf.mxu0 }
 0x187   :  { %v469_v62 = vmul.f32 0.70710677, %v409_v60  ;;  %v401_v63 = vadd.f32 %v1258_v42, %v400_v61  ;;  %v453_v56 = vmul.f32 0.5, %v409_v60 }
 0x188   :  { %v895_v3 = vpop.eup %894  ;;  %v792_v4 = vpop.f32.mrf.mxu0 }
 0x189   :  { %v897_v6 = vpop.eup %896  ;;  %v467_v8 = vmul.f32 0.70710677, %v401_v63  ;;  %v412_v9 = vadd.f32 %v792_v4, %v1258_v42  ;;  %v495_v15 = vadd.f32 1.0, %v895_v3  ;;  %902 = verf.f32 %v469_v62 }
 0x18a   :  { %v899_v7 = vpop.eup %898  ;;  %v403_v14 = vpop.f32.mrf.mxu0  ;;  %v497_v23 = vadd.f32 1.0, %v897_v6  ;;  %v451_v10 = vmul.f32 0.5, %v401_v63 }
 0x18b   :  { %v498_v18 = vadd.f32 1.0, %v899_v7  ;;  %v404_v19 = vadd.f32 %v1258_v42, %v403_v14  ;;  %904 = verf.f32 %v467_v8  ;;  %v470_v25 = vmul.f32 0.70710677, %v412_v9 }
 0x18c   :  { %v901_v22 = vpop.eup %900  ;;  %v511_v28 = vmul.f32 %v495_v15, %v447_v26  ;;  %v513_v30 = vmul.f32 %v497_v23, %v449_v33  ;;  %v454_v41 = vmul.f32 0.5, %v412_v9 }
 0x18d   :  { %v496_v32 = vadd.f32 1.0, %v901_v22  ;;  %v468_v47 = vmul.f32 0.70710677, %v404_v19  ;;  %v514_v48 = vmul.f32 %v498_v18, %v450_v24  ;;  %906 = verf.f32 %v470_v25 }
 0x18e   :  { %v452_v11 = vmul.f32 0.5, %v404_v19 }
 0x18f   :  { %v512_v29 = vmul.f32 %v496_v32, %v448_v27  ;;  %908 = verf.f32 %v468_v47  ;;  %v528_v36 = vpack.c.bf16 %v514_v48, %v513_v30 }
 0x191   :  { %v527_v31 = vpack.c.bf16 %v512_v29, %v511_v28 }
 0x193   :  { %817 = vmatprep.mubr.bf16.mxu0 %v527_v31 }
 0x194   :  { %v795_v12 = vpop.f32.mrf.mxu0  ;;  %818 = vmatmul.mubr.bf16.vlgmr.msra.gmra.mxu0 %v528_v36 }
 0x195   :  { %v425_v34 = vadd.f32 %v795_v12, %v1258_v42 }
 0x196   :  { %v416_v37 = vpop.f32.mrf.mxu0  ;;  %v903_v35 = vpop.eup %902 }
 0x197   :  { %v417_v2 = vadd.f32 %v1258_v42, %v416_v37  ;;  %v473_v38 = vmul.f32 0.70710677, %v425_v34  ;;  %v501_v55 = vadd.f32 1.0, %v903_v35  ;;  %v457_v27 = vmul.f32 0.5, %v425_v34 }
 0x198   :  { %v796_v39 = vpop.f32.mrf.mxu0  ;;  %v905_v16 = vpop.eup %904 }
 0x199   :  { %v471_v17 = vmul.f32 0.70710677, %v417_v2  ;;  %v428_v52 = vadd.f32 %v796_v39, %v1258_v42  ;;  %v499_v50 = vadd.f32 1.0, %v905_v16  ;;  %v517_v45 = vmul.f32 %v501_v55, %v453_v56 }
 0x19a   :  { %v419_v53 = vpop.f32.mrf.mxu0  ;;  %v907_v40 = vpop.eup %906  ;;  %v455_v23 = vmul.f32 0.5, %v417_v2 }
 0x19b   :  { %910 = verf.f32 %v471_v17  ;;  %v420_v49 = vadd.f32 %v1258_v42, %v419_v53  ;;  %v502_v1 = vadd.f32 1.0, %v907_v40  ;;  %v474_v5 = vmul.f32 0.70710677, %v428_v52 }
 0x19c   :  { %v909_v54 = vpop.eup %908  ;;  %912 = verf.f32 %v473_v38  ;;  %v515_v57 = vmul.f32 %v499_v50, %v451_v10  ;;  %v458_v9 = vmul.f32 0.5, %v428_v52  ;;  %v746_v50 = vld [vmem:[%s1286_s4] ss:$0 sm:$0xff]  ;;  %s948_s4 = smov [#allocation2]  }
 0x19d   :  { %v472_v43 = vmul.f32 0.70710677, %v420_v49  ;;  %v500_v20 = vadd.f32 1.0, %v909_v54  ;;  %v518_v21 = vmul.f32 %v502_v1, %v454_v41  ;;  %914 = verf.f32 %v474_v5  ;;  %s724_s20 = sshll.u32 %s948_s4, 4  ;;  %s725_s20 = int_to_ptr.vmem [resolvable:$true] %s724_s20 }
 0x19e   :  { %v456_v24 = vmul.f32 0.5, %v420_v49  ;;  %s926_s21 = scalar_lea.vmem %s725_s20, 2048  ;;  %p931_p1 = scmp.lt.s32.totalorder %s725_s20, %s725_s20 }
 0x19f   :  { %916 = verf.f32 %v472_v43  ;;  %v516_v44 = vmul.f32 %v500_v20, %v452_v11  ;;  %v530_v0 = vpack.c.bf16 %v518_v21, %v517_v45  ;;  %p927_p0 = scmp.ne.s32.totalorder %s725_s20, %s926_s21  ;;  %p932_p2 = scmp.lt.s32.totalorder %s926_s21, %s926_s21 }
 0x1a1   :  { %v529_v46 = vpack.c.bf16 %v516_v44, %v515_v57  ;;  %p933_p3 = por %p932_p2, %p931_p1 }
 0x1a3   :  { %821 = vmatprep.mubr.bf16.mxu1 %v529_v46  ;;  %p934_p4 = pnand %p933_p3, %p927_p0 }
 0x1a4   :  { %v799_v13 = vpop.f32.mrf.mxu0  ;;  %822 = vmatmul.mubr.bf16.vlgmr.msra.gmra.mxu1 %v530_v0 }
 0x1a5   :  { %v441_v51 = vadd.f32 %v799_v13, %v1258_v42 }
 0x1a6   :  { %v432_v58 = vpop.f32.mrf.mxu0 }
 0x1a7   :  { %v477_v59 = vmul.f32 0.70710677, %v441_v51  ;;  %v433_v61 = vadd.f32 %v1258_v42, %v432_v58  ;;  %v461_v16 = vmul.f32 0.5, %v441_v51 }
 0x1a8   :  { %v911_v62 = vpop.eup %910  ;;  %v800_v63 = vpop.f32.mrf.mxu0 }
 0x1a9   :  { %v913_v60 = vpop.eup %912  ;;  %v475_v3 = vmul.f32 0.70710677, %v433_v61  ;;  %v444_v4 = vadd.f32 %v800_v63, %v1258_v42  ;;  %v503_v8 = vadd.f32 1.0, %v911_v62  ;;  %918 = verf.f32 %v477_v59 }
 0x1aa   :  { %v435_v6 = vpop.f32.mrf.mxu0  ;;  %v915_v7 = vpop.eup %914  ;;  %v505_v18 = vadd.f32 1.0, %v913_v60  ;;  %v459_v38 = vmul.f32 0.5, %v433_v61 }
 0x1ab   :  { %v436_v14 = vadd.f32 %v1258_v42, %v435_v6  ;;  %v506_v19 = vadd.f32 1.0, %v915_v7  ;;  %920 = verf.f32 %v475_v3  ;;  %v478_v22 = vmul.f32 0.70710677, %v444_v4 }
 0x1ac   :  { %v917_v15 = vpop.eup %916  ;;  %v519_v47 = vmul.f32 %v503_v8, %v455_v23  ;;  %v521_v48 = vmul.f32 %v505_v18, %v457_v27  ;;  %v462_v2 = vmul.f32 0.5, %v444_v4 }
 0x1ad   :  { %v504_v25 = vadd.f32 1.0, %v917_v15  ;;  %v476_v26 = vmul.f32 0.70710677, %v436_v14  ;;  %v522_v32 = vmul.f32 %v506_v19, %v458_v9  ;;  %922 = verf.f32 %v478_v22 }
 0x1ae   :  { %v460_v34 = vmul.f32 0.5, %v436_v14 }
 0x1af   :  { %v520_v33 = vmul.f32 %v504_v25, %v456_v24  ;;  %924 = verf.f32 %v476_v26  ;;  %v532_v29 = vpack.c.bf16 %v522_v32, %v521_v48 }
 0x1b1   :  { %v531_v28 = vpack.c.bf16 %v520_v33, %v519_v47 }
 0x1b3   :  { %825 = vmatprep.mubr.bf16.mxu1 %v531_v28 }
 0x1b4   :  { %826 = vmatmul.mubr.bf16.gmra.mxu1 %v532_v29 }
 0x1b6   :  { %v919_v42 = vpop.eup %918 }
 0x1b7   :  { %v509_v37 = vadd.f32 1.0, %v919_v42 }
 0x1b8   :  { %v921_v30 = vpop.eup %920 }
 0x1b9   :  { %v507_v36 = vadd.f32 1.0, %v921_v30  ;;  %v525_v40 = vmul.f32 %v509_v37, %v461_v16 }
 0x1ba   :  { %v923_v31 = vpop.eup %922 }
 0x1bb   :  { %v510_v35 = vadd.f32 1.0, %v923_v31  ;;  %v523_v52 = vmul.f32 %v507_v36, %v459_v38 }
 0x1bc   :  { %v925_v12 = vpop.eup %924 }
 0x1bd   :  { %v508_v39 = vadd.f32 1.0, %v925_v12  ;;  %v526_v17 = vmul.f32 %v510_v35, %v462_v2 }
 0x1bf   :  { %v524_v53 = vmul.f32 %v508_v39, %v460_v34  ;;  %v534_v49 = vpack.c.bf16 %v526_v17, %v525_v40 }
 0x1c1   :  { %v533_v41 = vpack.c.bf16 %v524_v53, %v523_v52 }
 0x1c3   :  { %829 = vmatprep.mubr.bf16.mxu1 %v533_v41 }
 0x1c4   :  { %830 = vmatmul.mubr.bf16.gmra.mxu1 %v534_v49 }
 0x254   :  { %v819_v54 = vpop.f32.mrf.mxu0 }
 0x255   :  { %v649_v55 = vadd.f32 %v819_v54, %v746_v50 }
 0x256   :  { %v640_v1 = vpop.f32.mrf.mxu0 }
 0x257   :  { %705 = vst [vmem:[#allocation2 + $0x10] sm:$0xff] %v649_v55  ;;  %v641_v5 = vadd.f32 %v746_v50, %v640_v1 }
 0x258   :  { %v820_v10 = vpop.f32.mrf.mxu0 }
 0x259   :  { %703 = vst [vmem:[#allocation2] sm:$0xff] %v641_v5  ;;  %v652_v11 = vadd.f32 %v820_v10, %v746_v50 }
 0x25a   :  { %v643_v43 = vpop.f32.mrf.mxu0 }
 0x25b   :  { %706 = vst [vmem:[#allocation2 + $0x18] sm:$0xff] %v652_v11  ;;  %v644_v20 = vadd.f32 %v746_v50, %v643_v43 }
 0x25d   :  { %704 = vst [vmem:[#allocation2 + $0x8] sm:$0xff] %v644_v20 }
 0x264   :  { %v823_v56 = vpop.f32.mrf.mxu1 }
 0x265   :  { %v665_v21 = vadd.f32 %v823_v56, %v746_v50 }
 0x266   :  { %v656_v57 = vpop.f32.mrf.mxu1 }
 0x267   :  { %709 = vst [vmem:[#allocation2 + $0x30] sm:$0xff] %v665_v21  ;;  %v657_v44 = vadd.f32 %v746_v50, %v656_v57 }
 0x268   :  { %v824_v45 = vpop.f32.mrf.mxu1 }
 0x269   :  { %707 = vst [vmem:[#allocation2 + $0x20] sm:$0xff] %v657_v44  ;;  %v668_v46 = vadd.f32 %v824_v45, %v746_v50 }
 0x26a   :  { %v659_v0 = vpop.f32.mrf.mxu1 }
 0x26b   :  { %710 = vst [vmem:[#allocation2 + $0x38] sm:$0xff] %v668_v46  ;;  %v660_v13 = vadd.f32 %v746_v50, %v659_v0 }
 0x26d   :  { %708 = vst [vmem:[#allocation2 + $0x28] sm:$0xff] %v660_v13 }
 0x274   :  { %v827_v51 = vpop.f32.mrf.mxu1 }
 0x275   :  { %v681_v58 = vadd.f32 %v827_v51, %v746_v50 }
 0x276   :  { %v672_v59 = vpop.f32.mrf.mxu1 }
 0x277   :  { %713 = vst [vmem:[#allocation2 + $0x50] sm:$0xff] %v681_v58  ;;  %v673_v61 = vadd.f32 %v746_v50, %v672_v59 }
 0x278   :  { %v828_v62 = vpop.f32.mrf.mxu1 }
 0x279   :  { %711 = vst [vmem:[#allocation2 + $0x40] sm:$0xff] %v673_v61  ;;  %v684_v63 = vadd.f32 %v828_v62, %v746_v50 }
 0x27a   :  { %v675_v60 = vpop.f32.mrf.mxu1 }
 0x27b   :  { %714 = vst [vmem:[#allocation2 + $0x58] sm:$0xff] %v684_v63  ;;  %v676_v3 = vadd.f32 %v746_v50, %v675_v60 }
 0x27d   :  { %712 = vst [vmem:[#allocation2 + $0x48] sm:$0xff] %v676_v3 }
 0x284   :  { %v831_v4 = vpop.f32.mrf.mxu1 }
 0x285   :  { %v697_v6 = vadd.f32 %v831_v4, %v746_v50 }
 0x286   :  { %v688_v7 = vpop.f32.mrf.mxu1 }
 0x287   :  { %717 = vst [vmem:[#allocation2 + $0x70] sm:$0xff] %v697_v6  ;;  %v689_v8 = vadd.f32 %v746_v50, %v688_v7 }
 0x288   :  { %v832_v9 = vpop.f32.mrf.mxu1 }
 0x289   :  { %715 = vst [vmem:[#allocation2 + $0x60] sm:$0xff] %v689_v8  ;;  %v700_v14 = vadd.f32 %v832_v9, %v746_v50 }
 0x28a   :  { %v691_v15 = vpop.f32.mrf.mxu1 }
 0x28b   :  { %718 = vst [vmem:[#allocation2 + $0x78] sm:$0xff] %v700_v14  ;;  %v692_v18 = vadd.f32 %v746_v50, %v691_v15 }
 0x28d   :  { %716 = vst [vmem:[#allocation2 + $0x68] sm:$0xff] %v692_v18 }
 0x28e   :  { %937 = shalt.err (!%p934_p4)
}
 0x28f   :  { %s949_s22 = smov 128   ;;  %s950_s23 = smov 8  }
 0x290   :  { %730 = dma.vmem_to_hbm [thread:$0]  %s725_s20, 2048, %s1287_s5, [#allocation3], %s949_s22, %s949_s22, %s950_s23  }
 0x291   :  { %946 = dma.done.wait [#allocation3], 2048  }
 0x292   :  { %947 = vsyncadd [#allocation3], 4294965248 }
 0x293   :  { %734 = vsyncpa [#allocation3], 1 }

</bundles_post_ra>
